<compile_context>
chip_gen: v5e
topology: v5e:2x2
jax: 0.10.0
libtpu: 0.0.40
codegen_flags: <defaults>
</compile_context>

<pallas_src>
import math

import jax
import jax.numpy as jnp
from jax.experimental import pallas as pl
from jax.experimental.pallas import tpu as pltpu


# ---------------------------------------------------------------------------
# helpers
# ---------------------------------------------------------------------------

def _pick_tile(dim, target):
    """Largest tile <= target that evenly divides dim (prefers 128-multiples)."""
    if dim <= target:
        return dim
    best = 1
    for t in range(target, 0, -1):
        if dim % t == 0:
            if t % 128 == 0:
                return t
            if best == 1:
                best = t
    return best


# ---------------------------------------------------------------------------
# Tiled linear (x @ w + b) kernel
# ---------------------------------------------------------------------------

def _linear_kernel(x_ref, w_ref, b_ref, o_ref, acc_ref):
    k = pl.program_id(2)

    @pl.when(k == 0)
    def _():
        acc_ref[...] = jnp.zeros(acc_ref.shape, jnp.float32)

    acc_ref[...] += jnp.dot(x_ref[...], w_ref[...],
                            preferred_element_type=jnp.float32)

    @pl.when(k == pl.num_programs(2) - 1)
    def _():
        o_ref[...] = (acc_ref[...] + b_ref[...]).astype(o_ref.dtype)


def pallas_linear(x2d, w, b, out_dtype=jnp.bfloat16,
                  tm_target=256, tn_target=256, tk_target=512):
    """x2d: (M, Kin) bf16, w: (Kin, Kout) bf16, b: (Kout,) f32 -> (M, Kout)."""
    M, Kin = x2d.shape
    Kin2, Kout = w.shape
    assert Kin == Kin2
    tm = _pick_tile(M, tm_target)
    tn = _pick_tile(Kout, tn_target)
    tk = _pick_tile(Kin, tk_target)
    grid = (M // tm, Kout // tn, Kin // tk)
    return pl.pallas_call(
        _linear_kernel,
        out_shape=jax.ShapeDtypeStruct((M, Kout), out_dtype),
        grid_spec=pltpu.PrefetchScalarGridSpec(
            num_scalar_prefetch=0,
            grid=grid,
            in_specs=[
                pl.BlockSpec((tm, tk), lambda i, j, k: (i, k)),
                pl.BlockSpec((tk, tn), lambda i, j, k: (k, j)),
                pl.BlockSpec((1, tn), lambda i, j, k: (0, j)),
            ],
            out_specs=pl.BlockSpec((tm, tn), lambda i, j, k: (i, j)),
            scratch_shapes=[pltpu.VMEM((tm, tn), jnp.float32)],
        ),
        compiler_params=pltpu.CompilerParams(
            dimension_semantics=("parallel", "parallel", "arbitrary"),
        ),
    )(x2d, w, b.reshape(1, Kout).astype(jnp.float32))


# ---------------------------------------------------------------------------
# Flash attention (online softmax) kernel
# ---------------------------------------------------------------------------

def _flash_attn_kernel(q_ref, k_ref, v_ref, o_ref, m_ref, l_ref, acc_ref):
    kv_i = pl.program_id(3)

    @pl.when(kv_i == 0)
    def _():
        m_ref[...] = jnp.full(m_ref.shape, -jnp.inf, dtype=jnp.float32)
        l_ref[...] = jnp.zeros(l_ref.shape, jnp.float32)
        acc_ref[...] = jnp.zeros(acc_ref.shape, jnp.float32)

    q = q_ref[0, 0]            # (bq, D)  bf16, softmax scale pre-folded
    k = k_ref[0, 0]            # (bkv, D) bf16
    v = v_ref[0, 0]            # (bkv, D) bf16

    # Scores: contract head dims directly (no in-kernel transpose of K).
    s = jax.lax.dot_general(q, k, (((1,), (1,)), ((), ())),
                            preferred_element_type=jnp.float32)   # (bq, bkv) f32
    # noop score_mod: scores unchanged.
    # TODO(synk): arbitrary user-provided score_mod / block_mask callbacks are
    # not expressible generically here; only the noop / no-mask path is done.

    m_prev = m_ref[...]                                           # (bq, 1) f32
    m_new = jnp.maximum(m_prev, jnp.max(s, axis=-1, keepdims=True))
    alpha = jnp.exp(m_prev - m_new)
    p = jnp.exp(s - m_new)                                        # f32
    l_ref[...] = alpha * l_ref[...] + jnp.sum(p, axis=-1, keepdims=True)
    acc_ref[...] = alpha * acc_ref[...] + jnp.dot(
        p.astype(v.dtype), v, preferred_element_type=jnp.float32)
    m_ref[...] = m_new

    @pl.when(kv_i == pl.num_programs(3) - 1)
    def _():
        o_ref[0, 0] = (acc_ref[...] *
                       pl.reciprocal(l_ref[...], approx=True)).astype(o_ref.dtype)


def pallas_flash_mha(q, k, v, block_q=256, block_kv=256, out_dtype=jnp.bfloat16):
    """q, k, v: (B, H, N, D) bf16 (scale already folded into q) -> (B, H, N, D)."""
    B, H, N, D = q.shape
    bq = _pick_tile(N, block_q)
    bkv = _pick_tile(N, block_kv)
    grid = (B, H, N // bq, N // bkv)
    q_spec = pl.BlockSpec((1, 1, bq, D), lambda b, h, qi, ki: (b, h, qi, 0))
    kv_spec = pl.BlockSpec((1, 1, bkv, D), lambda b, h, qi, ki: (b, h, ki, 0))
    return pl.pallas_call(
        _flash_attn_kernel,
        out_shape=jax.ShapeDtypeStruct((B, H, N, D), out_dtype),
        grid_spec=pltpu.PrefetchScalarGridSpec(
            num_scalar_prefetch=0,
            grid=grid,
            in_specs=[q_spec, kv_spec, kv_spec],
            out_specs=q_spec,
            scratch_shapes=[
                pltpu.VMEM((bq, 1), jnp.float32),   # running max
                pltpu.VMEM((bq, 1), jnp.float32),   # running denom
                pltpu.VMEM((bq, D), jnp.float32),   # un-normalized output acc
            ],
        ),
        compiler_params=pltpu.CompilerParams(
            dimension_semantics=("parallel", "parallel", "parallel", "arbitrary"),
        ),
    )(q, k, v)


# ---------------------------------------------------------------------------
# FlexAttention module (forward only)
# ---------------------------------------------------------------------------

class FlexAttentionPallas:
    def __init__(self, embed_dim, num_heads, qkv_dim=None, key=None):
        if qkv_dim is None:
            assert embed_dim % num_heads == 0
            qkv_dim = embed_dim // num_heads
        self.embed_dim = embed_dim
        self.num_heads = num_heads
        self.qkv_dim = qkv_dim

        if key is None:
            key = jax.random.PRNGKey(0)
        k1, k2, k3, k4 = jax.random.split(key, 4)
        inner = qkv_dim * num_heads
        # Deterministic synthetic init (stands in for basic_module_init).
        self.w_qkv = (jax.random.normal(k1, (embed_dim, inner * 3), jnp.float32)
                      * (1.0 / math.sqrt(embed_dim)))
        self.b_qkv = jax.random.normal(k2, (inner * 3,), jnp.float32) * 0.01
        self.w_head = (jax.random.normal(k3, (inner, embed_dim), jnp.float32)
                       * (1.0 / math.sqrt(inner)))
        self.b_head = jax.random.normal(k4, (embed_dim,), jnp.float32) * 0.01

        # bf16 MXU-operand copies (biases stay f32; added to f32 accumulator).
        self.w_qkv_c = self.w_qkv.astype(jnp.bfloat16)
        self.w_head_c = self.w_head.astype(jnp.bfloat16)

    def __call__(self, x):
        # x: (B, N, embed_dim)
        B, N, C = x.shape
        H, D = self.num_heads, self.qkv_dim
        inner = H * D
        scale = 1.0 / math.sqrt(D)   # flex_attention default scale = 1/sqrt(head_dim)

        # qkv projection (tiled Pallas matmul, bf16 operands / f32 accumulate)
        x_c = x.reshape(B * N, C).astype(jnp.bfloat16)
        qkv = pallas_linear(x_c, self.w_qkv_c, self.b_qkv,
                            out_dtype=jnp.bfloat16)              # (B*N, 3*inner)
        qkv = qkv.reshape(B, N, 3, H, D)
        # TODO(synk): emit q/k/v directly in (B, H, N, D) via out_specs index-map
        # plumbing to skip these transposes; kept in the wrapper so all Pallas
        # block shapes stay (8,128)-safe at small head_dim.
        q = qkv[:, :, 0].transpose(0, 2, 1, 3)                    # (B, H, N, D)
        k = qkv[:, :, 1].transpose(0, 2, 1, 3)
        v = qkv[:, :, 2].transpose(0, 2, 1, 3)
        # Fold softmax scale into q once (N*D work, amortized over all KV tiles).
        q = (q.astype(jnp.float32) * scale).astype(jnp.bfloat16)

        o = pallas_flash_mha(q, k, v, out_dtype=jnp.bfloat16)     # (B, H, N, D)
        o = o.transpose(0, 2, 1, 3).reshape(B * N, inner)

        # output projection (tiled Pallas matmul), final output in f32
        out = pallas_linear(o, self.w_head_c, self.b_head, out_dtype=jnp.float32)
        return out.reshape(B, N, self.embed_dim)


# ---------------------------------------------------------------------------
# Pure-JAX reference (bf16-quantized operands, f32 math) for sanity check
# ---------------------------------------------------------------------------

def reference_forward(mod, x):
    B, N, C = x.shape
    H, D = mod.num_heads, mod.qkv_dim
    inner = H * D
    f32 = jnp.float32
    xq = x.astype(jnp.bfloat16).astype(f32)
    w_qkv = mod.w_qkv_c.astype(f32)
    w_head = mod.w_head_c.astype(f32)

    qkv = (xq.reshape(B * N, C) @ w_qkv + mod.b_qkv)
    qkv = qkv.astype(jnp.bfloat16).astype(f32).reshape(B, N, 3, H, D)
    q = qkv[:, :, 0].transpose(0, 2, 1, 3)
    k = qkv[:, :, 1].transpose(0, 2, 1, 3)
    v = qkv[:, :, 2].transpose(0, 2, 1, 3)
    s = jnp.einsum("bhqd,bhkd->bhqk", q, k) / math.sqrt(D)
    p = jax.nn.softmax(s, axis=-1)
    o = jnp.einsum("bhqk,bhkd->bhqd", p, v)
    o = o.astype(jnp.bfloat16).astype(f32)
    o = o.transpose(0, 2, 1, 3).reshape(B * N, inner)
    return (o @ w_head + mod.b_head).reshape(B, N, mod.embed_dim)


if __name__ == "__main__":
    B, N, embed_dim, num_heads = 2, 16, 32, 4

    key = jax.random.PRNGKey(0)
    kx, kp = jax.random.split(key)
    x = jax.random.normal(kx, (B, N, embed_dim), jnp.float32)

    mod = FlexAttentionPallas(embed_dim, num_heads, key=kp)

    out = jax.block_until_ready(mod(x))
    ref = reference_forward(mod, x)

    assert out.shape == (B, N, embed_dim)
    max_err = jnp.max(jnp.abs(out - ref))
    assert jnp.allclose(out, ref, atol=2e-2, rtol=2e-2), f"max err {max_err}"

    print("KERNEL_OK")
</pallas_src>

<mosaic_0001>
module attributes {stable_mosaic.version = 11 : i64} {
  func.func @_linear_kernel(%arg0: i32, %arg1: i32, %arg2: i32, %arg3: memref<32x32xbf16, #tpu.memory_space<vmem>>, %arg4: memref<32x96xbf16, #tpu.memory_space<vmem>>, %arg5: memref<1x96xf32, #tpu.memory_space<vmem>>, %arg6: memref<32x96xbf16, #tpu.memory_space<vmem>>, %arg7: memref<32x96xf32, #tpu.memory_space<vmem>>) attributes {dimension_semantics = [#tpu.dimension_semantics<parallel>, #tpu.dimension_semantics<parallel>, #tpu.dimension_semantics<arbitrary>], iteration_bounds = array<i64: 1, 1, 1>, scalar_prefetch = 0 : i64, scratch_operands = 1 : i64, tpu.core_type = #tpu.core_type<tc>, window_params = [{transform_indices = @transform_0, window_bounds = array<i64: 32, 32>}, {transform_indices = @transform_1, window_bounds = array<i64: 32, 96>}, {transform_indices = @transform_2, window_bounds = array<i64: 1, 96>}, {transform_indices = @transform_3, window_bounds = array<i64: 32, 96>}]} {
    %c0_i32 = arith.constant 0 : i32
    %0 = arith.cmpi eq, %arg2, %c0_i32 : i32
    %1 = arith.extui %0 : i1 to i32
    %c0_i32_0 = arith.constant 0 : i32
    %2 = arith.cmpi ne, %1, %c0_i32_0 : i32
    scf.if %2 {
      %cst_10 = arith.constant 0.000000e+00 : f32
      %12 = vector.broadcast %cst_10 : f32 to vector<32x96xf32>
      %c0_11 = arith.constant 0 : index
      %c0_12 = arith.constant 0 : index
      %13 = vector.load %arg7[%c0_11, %c0_12] : memref<32x96xf32, #tpu.memory_space<vmem>>, vector<32x96xf32>
      tpu.vector_store %arg7[%c0_11, %c0_12], %12 {strides = array<i32>} : memref<32x96xf32, #tpu.memory_space<vmem>>, vector<32x96xf32>,
    } else {
    }
    %c0 = arith.constant 0 : index
    %c0_1 = arith.constant 0 : index
    %3 = vector.load %arg7[%c0, %c0_1] : memref<32x96xf32, #tpu.memory_space<vmem>>, vector<32x96xf32>
    %c0_2 = arith.constant 0 : index
    %c0_3 = arith.constant 0 : index
    %4 = vector.load %arg3[%c0_2, %c0_3] : memref<32x32xbf16, #tpu.memory_space<vmem>>, vector<32x32xbf16>
    %c0_4 = arith.constant 0 : index
    %c0_5 = arith.constant 0 : index
    %5 = vector.load %arg4[%c0_4, %c0_5] : memref<32x96xbf16, #tpu.memory_space<vmem>>, vector<32x96xbf16>
    %cst = arith.constant dense<0.000000e+00> : vector<32x96xf32>
    %6 = tpu.matmul %4, %5, %cst {dimension_numbers = #tpu.dot_dimension_numbers<[1], [0], [0], [1], [0, 0, 1, 1], [], []>} : vector<32x32xbf16>, vector<32x96xbf16>, vector<32x96xf32> -> vector<32x96xf32>
    %7 = arith.addf %3, %6 : vector<32x96xf32>
    %c0_6 = arith.constant 0 : index
    %c0_7 = arith.constant 0 : index
    %8 = vector.load %arg7[%c0_6, %c0_7] : memref<32x96xf32, #tpu.memory_space<vmem>>, vector<32x96xf32>
    tpu.vector_store %arg7[%c0_6, %c0_7], %7 {strides = array<i32>} : memref<32x96xf32, #tpu.memory_space<vmem>>, vector<32x96xf32>,
    %c0_i32_8 = arith.constant 0 : i32
    %9 = arith.cmpi eq, %arg2, %c0_i32_8 : i32
    %10 = arith.extui %9 : i1 to i32
    %c0_i32_9 = arith.constant 0 : i32
    %11 = arith.cmpi ne, %10, %c0_i32_9 : i32
    scf.if %11 {
      %c0_10 = arith.constant 0 : index
      %c0_11 = arith.constant 0 : index
      %12 = vector.load %arg7[%c0_10, %c0_11] : memref<32x96xf32, #tpu.memory_space<vmem>>, vector<32x96xf32>
      %c0_12 = arith.constant 0 : index
      %c0_13 = arith.constant 0 : index
      %13 = vector.load %arg5[%c0_12, %c0_13] : memref<1x96xf32, #tpu.memory_space<vmem>>, vector<1x96xf32>
      %14 = vector.broadcast %13 : vector<1x96xf32> to vector<32x96xf32>
      %15 = arith.addf %12, %14 : vector<32x96xf32>
      %16 = arith.truncf %15 : vector<32x96xf32> to vector<32x96xbf16>
      %c0_14 = arith.constant 0 : index
      %c0_15 = arith.constant 0 : index
      %17 = vector.load %arg6[%c0_14, %c0_15] : memref<32x96xbf16, #tpu.memory_space<vmem>>, vector<32x96xbf16>
      tpu.vector_store %arg6[%c0_14, %c0_15], %16 {strides = array<i32>} : memref<32x96xbf16, #tpu.memory_space<vmem>>, vector<32x96xbf16>,
    } else {
    }
    return
  }
  func.func @transform_0(%arg0: i32, %arg1: i32, %arg2: i32) -> (i32, i32) {
    %c0_i32 = arith.constant 0 : i32
    return %arg0, %arg2 : i32, i32
  }
  func.func @transform_1(%arg0: i32, %arg1: i32, %arg2: i32) -> (i32, i32) {
    %c0_i32 = arith.constant 0 : i32
    return %arg2, %arg1 : i32, i32
  }
  func.func @transform_2(%arg0: i32, %arg1: i32, %arg2: i32) -> (i32, i32) {
    %c0_i32 = arith.constant 0 : i32
    %c0_i32_0 = arith.constant 0 : i32
    return %c0_i32, %arg1 : i32, i32
  }
  func.func @transform_3(%arg0: i32, %arg1: i32, %arg2: i32) -> (i32, i32) {
    %c0_i32 = arith.constant 0 : i32
    return %arg0, %arg1 : i32, i32
  }
}

</mosaic_0001>

<bundles_post_ra>
// kernel: tpu_custom_call.1
= control target key start
LH: loop header
LB: loop body
LE: loop exit
PB: predicated region body
PF: predicated region fallthrough
CT: control target
= control target key end

     0   :  { %8 = vsyncpa [#allocation4], 0  ;;  %s338_s0 = inlined_call_operand.hbm [shape: bf16[32,32], index: 0, kind: input, shape index: {}]   ;;  %s339_s1 = inlined_call_operand.hbm [shape: bf16[32,96], index: 1, kind: input, shape index: {}]   ;;  %s340_s2 = inlined_call_operand.vmem [shape: f32[1,96], index: 2, kind: input, shape index: {}]   ;;  %s341_s3 = inlined_call_operand.hbm [shape: bf16[32,96], index: 3, kind: output, shape index: {}]  }
   0x1   :  { %9 = vsyncpa [#allocation7], 0 }
   0x2   :  { %10 = vsyncpa [#allocation5], 0  ;;  %s15_s14 = sshll.u32 %s338_s0, 4  ;;  %s279_s15 = smov [#allocation3]   ;;  %s16_s14 = int_to_ptr.hbm [resolvable:$true] %s15_s14 }
   0x3   :  { %s17_s16 = sshll.u32 %s279_s15, 4  ;;  %s28_s19 = sshll.u32 %s339_s1, 4  ;;  %s18_s16 = int_to_ptr.vmem [resolvable:$true] %s17_s16  ;;  %s29_s19 = int_to_ptr.hbm [resolvable:$true] %s28_s19 }
   0x4   :  { %s280_s20 = smov 64   ;;  %s281_s21 = smov 4  }
   0x5   :  { %23 = dma.hbm_to_vmem [thread:$0]  %s16_s14, 256, %s18_s16, [#allocation4], %s280_s20, %s280_s20, %s281_s21  }
   0x6   :  { %s282_s22 = smov [#allocation6]  }
   0x7   :  { %s30_s23 = sshll.u32 %s282_s22, 4  ;;  %s31_s23 = int_to_ptr.vmem [resolvable:$true] %s30_s23 }
   0x8   :  { %36 = dma.hbm_to_vmem [thread:$0]  %s29_s19, 256, %s31_s23, [#allocation7], %s280_s20, %s280_s20, %s281_s21  }
   0x9   :  { %273 = dma.done.wait [#allocation4], 256  }
   0xa   :  { %274 = vsyncadd [#allocation4], 4294967040 }
   0xb   :  { %275 = dma.done.wait [#allocation7], 256  }
   0xc   :  { %276 = vsyncadd [#allocation7], 4294967040  ;;  %vm52_vm0 = vcmask 785408   ;;  %v283_v0 = vmov 0.0   ;;  %v191_v1 = vld [vmem:[#allocation6 + $0x8] sm:$0xff]  ;;  %v190_v2 = vld [vmem:[#allocation6] sm:$0xff] }
   0xd   :  { %53 = vst.msk [vmem:[#allocation2] sm:$0xff] %vm52_vm0, %v283_v0  ;;  %104 = vmatpush.bf16.msra.mxu0 %v191_v1  ;;  %192 = vmatpush.bf16.msra.mxu1 %v191_v1  ;;  %v188_v3 = vld [vmem:[#allocation3] sm:$0xff]  ;;  %v189_v4 = vld [vmem:[#allocation3 + $0x8] sm:$0xff]  ;;  %vm91_vm1 = vcmask 261120   ;;  %vm145_vm2 = vcmask 781312   ;;  %s156_s27 = sshll.u32 %s341_s3, 4  ;;  %s157_s27 = int_to_ptr.hbm [resolvable:$true] %s156_s27 }
   0xe   :  { %54 = vst.msk [vmem:[#allocation2 + $0x8] sm:$0xff] %vm52_vm0, %v283_v0  ;;  %v200_v13 = vld [vmem:[%s340_s2] ss:$0 sm:$0xff]  ;;  %s284_s2 = smov [#allocation8]  }
   0xf   :  { %55 = vst.msk [vmem:[#allocation2 + $0x10] sm:$0xff] %vm52_vm0, %v283_v0  ;;  %s154_s24 = sshll.u32 %s284_s2, 4  ;;  %s155_s24 = int_to_ptr.vmem [resolvable:$true] %s154_s24 }
  0x10   :  { %56 = vst.msk [vmem:[#allocation2 + $0x18] sm:$0xff] %vm52_vm0, %v283_v0 }
  0x11   :  { %105 = vmatpush.bf16.msra.mxu0 %v190_v2  ;;  %193 = vmatpush.bf16.msra.mxu1 %v190_v2 }
  0x14   :  { %186 = vmatmul.msk.bf16.vlgmr.msra.gmra.mxu0 %vm91_vm1, %v188_v3  ;;  %187 = vmatmul.msk.bf16.vlgmr.msra.gmra.mxu1 %vm91_vm1, %v189_v4  ;;  %v57_v5 = vld [vmem:[#allocation2] sm:$0xff] }
  0x15   :  { %v58_v11 = vld [vmem:[#allocation2 + $0x8] sm:$0xff] }
  0x16   :  { %v59_v6 = vld [vmem:[#allocation2 + $0x10] sm:$0xff] }
  0x17   :  { %v60_v12 = vld [vmem:[#allocation2 + $0x18] sm:$0xff] }
  0x91   :  { %v107_v7 = vpop.f32.mrf.mxu0  ;;  %v112_v8 = vpop.f32.mrf.mxu1 }
  0x92   :  { %v117_v9 = vadd.f32 %v107_v7, %v57_v5  ;;  %v119_v10 = vadd.f32 %v112_v8, %v59_v6 }
  0x94   :  { %122 = vst.msk [vmem:[#allocation2] sm:$0xff] %vm52_vm0, %v117_v9 }
  0x95   :  { %124 = vst.msk [vmem:[#allocation2 + $0x10] sm:$0xff] %vm52_vm0, %v119_v10 }
  0x99   :  { %v109_v14 = vpop.f32.mrf.mxu0  ;;  %v114_v15 = vpop.f32.mrf.mxu1 }
  0x9a   :  { %v118_v16 = vadd.f32 %v109_v14, %v58_v11  ;;  %v120_v17 = vadd.f32 %v114_v15, %v60_v12 }
  0x9b   :  { %v129_v18 = vld [vmem:[#allocation2] sm:$0xff] }
  0x9c   :  { %123 = vst.msk [vmem:[#allocation2 + $0x8] sm:$0xff] %vm52_vm0, %v118_v16  ;;  %v131_v19 = vld [vmem:[#allocation2 + $0x10] sm:$0xff]  ;;  %v137_v20 = vadd.f32 %v200_v13, %v129_v18 }
  0x9d   :  { %125 = vst.msk [vmem:[#allocation2 + $0x18] sm:$0xff] %vm52_vm0, %v120_v17  ;;  %v139_v21 = vadd.f32 %v200_v13, %v131_v19 }
  0x9e   :  { %v141_v22 = vpack.c.bf16 %v137_v20, %v137_v20 }
  0x9f   :  { %v143_v23 = vpack.c.bf16 %v139_v21, %v139_v21 }
  0xa0   :  { %146 = vst.msk [vmem:[#allocation8] sm:$0xf] %vm145_vm2, %v141_v22 }
  0xa1   :  { %148 = vst.msk [vmem:[#allocation8 + $0x8] sm:$0xf] %vm145_vm2, %v143_v23 }
  0xa3   :  { %v130_v24 = vld [vmem:[#allocation2 + $0x8] sm:$0xff] }
  0xa4   :  { %v132_v25 = vld [vmem:[#allocation2 + $0x18] sm:$0xff]  ;;  %v138_v26 = vadd.f32 %v200_v13, %v130_v24 }
  0xa5   :  { %v140_v27 = vadd.f32 %v200_v13, %v132_v25 }
  0xa6   :  { %v142_v28 = vpack.c.bf16 %v138_v26, %v138_v26 }
  0xa7   :  { %v144_v29 = vpack.c.bf16 %v140_v27, %v140_v27 }
  0xa8   :  { %147 = vst.msk [vmem:[#allocation8 + $0x4] sm:$0xf] %vm145_vm2, %v142_v28 }
  0xa9   :  { %149 = vst.msk [vmem:[#allocation8 + $0xc] sm:$0xf] %vm145_vm2, %v144_v29 }
  0xaa   :  { %162 = dma.vmem_to_hbm [thread:$0]  %s155_s24, 256, %s157_s27, [#allocation5], %s280_s20, %s280_s20, %s281_s21  }
  0xab   :  { %277 = dma.done.wait [#allocation5], 256  }
  0xac   :  { %278 = vsyncadd [#allocation5], 4294967040 }
  0xad   :  { %167 = vsyncpa [#allocation4], 1 }
  0xae   :  { %168 = vsyncpa [#allocation7], 1 }
  0xaf   :  { %169 = vsyncpa [#allocation5], 1 }

</bundles_post_ra>
